<compile_context>
chip_gen: v6e
topology: v6e:2x2x1
jax: 0.10.0
libtpu: 0.0.40
codegen_flags: <defaults>
</compile_context>

<pallas_src>
import jax
import jax.numpy as jnp
from jax.experimental import pallas as pl
from jax.experimental.pallas import tpu as pltpu


_LANE = 128
_TILE_M_MAX = 512
_TILE_N_CANDIDATES = (2048, 1024, 512, 256, 128)


def _round_up(x, m):
    return (x + m - 1) // m * m


def _query_vmem():
    """Generation-aware VMEM budgeting.

    Returns (pipeline_buffer_budget_bytes, scoped_vmem_limit_bytes)."""
    cap = 64 * 1024 * 1024  # conservative default = v7x physical VMEM per TensorCore
    try:
        info = pltpu.get_tpu_info()
        cap = int(getattr(info, "vmem_capacity_bytes", cap))
    except Exception:
        pass
    # Scoped limit we request from Mosaic (leave headroom for internal scratch):
    #   v5e/v6e (128 MiB physical) -> 112 MiB, v7x (64 MiB physical) -> 52 MiB.
    limit = min(cap - 12 * 1024 * 1024, 112 * 1024 * 1024)
    limit = max(limit, 32 * 1024 * 1024)
    # Budget used when sizing the double-buffered pipeline tiles we account for.
    budget = min(limit - 8 * 1024 * 1024, 48 * 1024 * 1024)
    return budget, limit


_VMEM_BUDGET, _VMEM_LIMIT = _query_vmem()


def _pick_tiles(batch, in_f, n_pad, itemsize, other_parallel):
    """Choose (tile_m, tile_n): the biggest lane-dense tiles whose full double-buffered
    pipeline footprint (x + w + bias + out) fits the generation-aware VMEM budget, and
    that leave >=2 parallel grid blocks when possible (v7x megacore)."""

    def buf_bytes(tm, tn):
        # 2x (double-buffered) x tile + weight tile + bias tile + output tile.
        return 2 * itemsize * (tm * in_f + in_f * tn + tn + tm * tn)

    tm_cands = (batch,) if batch <= _TILE_M_MAX else (512, 256, 128)
    tn_cands = [c for c in _TILE_N_CANDIDATES if n_pad % c == 0]

    tile_m, tile_n = tm_cands[-1], _LANE
    for tm in tm_cands:
        fit = next((tn for tn in tn_cands if buf_bytes(tm, tn) <= _VMEM_BUDGET), None)
        if fit is not None:
            tile_m, tile_n = tm, fit
            break

    m_tiles = _round_up(batch, tile_m) // tile_m
    n_tiles = n_pad // tile_n
    if other_parallel * m_tiles * n_tiles < 2 and tile_n >= 2 * _LANE:
        tile_n //= 2  # give v7x's second TensorCore a block to work on
    return tile_m, tile_n


def _cost(flops, bytes_accessed):
    return pl.CostEstimate(flops=flops, transcendentals=0, bytes_accessed=bytes_accessed)


def _linear_block_kernel(x_ref, w_ref, b_ref, o_ref):
    # x: (TM, in_f)   w: (in_f, TN)   b: (1, TN)   o: (TM, TN)
    acc = jnp.dot(x_ref[...], w_ref[...], preferred_element_type=jnp.float32)
    o_ref[...] = (acc + b_ref[...].astype(jnp.float32)).astype(o_ref.dtype)


@jax.jit
def _linear_fused(x, w_cat, b_cat):
    """x: (B, in_f), w_cat: (in_f, N), b_cat: (1, N) -> (B, N); N is a multiple of 128.

    Grid is weight-major (n outer, m inner): the weight block index is constant across
    the inner batch axis, so every weight tile is streamed from HBM exactly once."""
    B, in_f = x.shape
    N = w_cat.shape[1]
    itemsize = max(x.dtype.itemsize, w_cat.dtype.itemsize)
    tile_m, tile_n = _pick_tiles(B, in_f, N, itemsize, other_parallel=1)
    B_pad = _round_up(B, tile_m)
    x_p = jnp.pad(x, ((0, B_pad - B), (0, 0))) if B_pad != B else x
    out = pl.pallas_call(
        _linear_block_kernel,
        out_shape=jax.ShapeDtypeStruct((B_pad, N), x.dtype),
        grid_spec=pl.GridSpec(
            grid=(N // tile_n, B_pad // tile_m),
            in_specs=[
                pl.BlockSpec((tile_m, in_f), lambda n, m: (m, 0)),
                pl.BlockSpec((in_f, tile_n), lambda n, m: (0, n)),
                pl.BlockSpec((1, tile_n), lambda n, m: (0, n)),
            ],
            out_specs=pl.BlockSpec((tile_m, tile_n), lambda n, m: (m, n)),
        ),
        compiler_params=pltpu.CompilerParams(
            dimension_semantics=("parallel", "parallel"),
            vmem_limit_bytes=_VMEM_LIMIT),
        cost_estimate=_cost(
            2 * B_pad * in_f * N,
            (x_p.size + B_pad * N) * x.dtype.itemsize
            + (w_cat.size + b_cat.size) * w_cat.dtype.itemsize),
    )(x_p, w_cat, b_cat)
    return out[:B] if B_pad != B else out


@jax.jit
def _linear_shared_head(x_stack, w, b):
    """x_stack: (T, B, in_f), w: (in_f, N), b: (1, N) -> (T, B, N); N multiple of 128.

    Grid order (n, t, m): the weight block index depends only on the OUTER axis, so the
    shared weight tile stays VMEM-resident across all T*M inner steps (DMA'd once per n)."""
    T, B, in_f = x_stack.shape
    N = w.shape[1]
    itemsize = max(x_stack.dtype.itemsize, w.dtype.itemsize)
    tile_m, tile_n = _pick_tiles(B, in_f, N, itemsize, other_parallel=T)
    B_pad = _round_up(B, tile_m)
    x_p = jnp.pad(x_stack, ((0, 0), (0, B_pad - B), (0, 0))) if B_pad != B else x_stack
    out = pl.pallas_call(
        _linear_block_kernel,
        out_shape=jax.ShapeDtypeStruct((T, B_pad, N), x_stack.dtype),
        grid_spec=pl.GridSpec(
            grid=(N // tile_n, T, B_pad // tile_m),
            in_specs=[
                pl.BlockSpec((None, tile_m, in_f), lambda n, t, m: (t, m, 0)),
                pl.BlockSpec((in_f, tile_n), lambda n, t, m: (0, n)),
                pl.BlockSpec((1, tile_n), lambda n, t, m: (0, n)),
            ],
            out_specs=pl.BlockSpec((None, tile_m, tile_n), lambda n, t, m: (t, m, n)),
        ),
        compiler_params=pltpu.CompilerParams(
            dimension_semantics=("parallel", "parallel", "parallel"),
            vmem_limit_bytes=_VMEM_LIMIT),
        cost_estimate=_cost(
            2 * T * B_pad * in_f * N,
            (x_p.size + T * B_pad * N) * x_stack.dtype.itemsize
            + (w.size + b.size) * w.dtype.itemsize),
    )(x_p, w, b)
    return out[:, :B] if B_pad != B else out


@jax.jit
def _linear_per_task(x_stack, w_stack, b_stack):
    """x_stack: (T, B, in_f), w_stack: (T, in_f, N), b_stack: (T, 1, N) -> (T, B, N).

    Grid (t, n, m): each task's weight tile is constant across the inner batch axis,
    so it is streamed once per (t, n) regardless of how many batch tiles there are."""
    T, B, in_f = x_stack.shape
    N = w_stack.shape[2]
    itemsize = max(x_stack.dtype.itemsize, w_stack.dtype.itemsize)
    tile_m, tile_n = _pick_tiles(B, in_f, N, itemsize, other_parallel=T)
    B_pad = _round_up(B, tile_m)
    x_p = jnp.pad(x_stack, ((0, 0), (0, B_pad - B), (0, 0))) if B_pad != B else x_stack
    out = pl.pallas_call(
        _linear_block_kernel,
        out_shape=jax.ShapeDtypeStruct((T, B_pad, N), x_stack.dtype),
        grid_spec=pl.GridSpec(
            grid=(T, N // tile_n, B_pad // tile_m),
            in_specs=[
                pl.BlockSpec((None, tile_m, in_f), lambda t, n, m: (t, m, 0)),
                pl.BlockSpec((None, in_f, tile_n), lambda t, n, m: (t, 0, n)),
                pl.BlockSpec((None, 1, tile_n), lambda t, n, m: (t, 0, n)),
            ],
            out_specs=pl.BlockSpec((None, tile_m, tile_n), lambda t, n, m: (t, m, n)),
        ),
        compiler_params=pltpu.CompilerParams(
            dimension_semantics=("parallel", "parallel", "parallel"),
            vmem_limit_bytes=_VMEM_LIMIT),
        cost_estimate=_cost(
            2 * T * B_pad * in_f * N,
            (x_p.size + T * B_pad * N) * x_stack.dtype.itemsize
            + (w_stack.size + b_stack.size) * w_stack.dtype.itemsize),
    )(x_p, w_stack, b_stack)
    return out[:, :B] if B_pad != B else out


class LinearRecon:
    """JAX/Pallas port of Linear_recon: a bank of n_tasks independent Linear layers."""

    def __init__(self, in_features, out_features, n_tasks=1, key=None,
                 dtype=jnp.float32, weight_dtype=None):
        self.in_features = in_features
        self.out_features = out_features
        self.n_tasks = n_tasks
        # Lane-dense padded head width (multiple of 128): keeps all output stores
        # unmasked and lets the weight slab be tiled on a 128-granular grid.
        self.out_pad = _round_up(out_features, _LANE)

        if key is None:
            key = jax.random.PRNGKey(0)
        kw, kb = jax.random.split(key)
        bound = 1.0 / (in_features ** 0.5)
        # Logical parameters, pre-transposed to (T, in_f, out_f): the MXU contracts
        # over in_f directly (no in-kernel transpose).  Mirrors nn.Linear init.
        self.weights = jax.random.uniform(
            kw, (n_tasks, in_features, out_features), dtype, -bound, bound)
        self.biases = jax.random.uniform(
            kb, (n_tasks, 1, out_features), dtype, -bound, bound)

        # Compute-time copies, zero-padded along out_features to a multiple of 128.
        # TODO(synk): store these in bf16 on v6e/v7x (matmul keeps f32 accumulation) for
        # ~2x weight bandwidth on the weight-BW-bound small-batch regime.
        cdt = weight_dtype if weight_dtype is not None else dtype
        pad = self.out_pad - out_features
        self._w = jnp.pad(self.weights, ((0, 0), (0, 0), (0, pad))).astype(cdt)
        self._b = jnp.pad(self.biases, ((0, 0), (0, 0), (0, pad))).astype(cdt)
        # Pre-fused lane-dense slab for the shared-input / multi-head fast path.
        self._w_cat = jnp.transpose(self._w, (1, 0, 2)).reshape(
            in_features, n_tasks * self.out_pad)
        self._b_cat = self._b.reshape(1, n_tasks * self.out_pad)

    def set_n_tasks(self, n_tasks=1):
        # TODO(synk): mirror Linear_recon.set_n_tasks (grow head bank by copying head 0);
        # omitted — forward semantics do not depend on it.
        raise NotImplementedError

    def __call__(self, x):
        # Reproduce the list-dispatch semantics of Linear_recon.forward.
        if not isinstance(x, list):
            x = [x]
        of, op = self.out_features, self.out_pad

        if len(x) == 1 and self.n_tasks > 1:
            # One shared input -> all task heads: single fused lane-dense matmul.
            y = _linear_fused(x[0], self._w_cat, self._b_cat)
            return [y[:, t * op:t * op + of] for t in range(self.n_tasks)]
        elif len(x) > 1 and self.n_tasks == 1:
            # One head applied to every input; the weight tile is DMA'd once total.
            x_stack = jnp.stack(x, axis=0)
            y = _linear_shared_head(x_stack, self._w[0], self._b[0])
            return [y[i, :, :of] for i in range(len(x))]
        elif len(x) == self.n_tasks:
            x_stack = jnp.stack(x, axis=0)
            y = _linear_per_task(x_stack, self._w, self._b)
            return [y[i, :, :of] for i in range(self.n_tasks)]
        else:
            raise ValueError("Error")


if __name__ == "__main__":
    key = jax.random.PRNGKey(0)
    k_x, k_p1, k_p2 = jax.random.split(key, 3)

    ok = True
    batch, in_features, out_features, n_tasks = 8, 128, 128, 2
    module = LinearRecon(in_features, out_features, n_tasks=n_tasks, key=k_p1)
    x = jax.random.normal(k_x, (batch, in_features), jnp.float32)

    # Path 1: single shared input, multiple task heads -> list of n_tasks outputs.
    outs = [jax.block_until_ready(o) for o in module(x)]
    for t, o in enumerate(outs):
        ref = x @ module.weights[t] + module.biases[t]
        ok = ok and (o.shape == (batch, out_features))
        ok = ok and bool(jnp.allclose(o, ref, atol=1e-4, rtol=1e-4))

    # Path 2: list of inputs, single shared head.
    single = LinearRecon(in_features, out_features, n_tasks=1, key=k_p1)
    xs = [x, x * 2.0, x - 1.0]
    outs2 = [jax.block_until_ready(o) for o in single(xs)]
    for xi, o in zip(xs, outs2):
        ref = xi @ single.weights[0] + single.biases[0]
        ok = ok and bool(jnp.allclose(o, ref, atol=1e-4, rtol=1e-4))

    # Path 3: matched list of inputs, one per task head.
    xs3 = [x, x * 0.5]
    outs3 = [jax.block_until_ready(o) for o in module(xs3)]
    for t, (xi, o) in enumerate(zip(xs3, outs3)):
        ref = xi @ module.weights[t] + module.biases[t]
        ok = ok and bool(jnp.allclose(o, ref, atol=1e-4, rtol=1e-4))

    # Path 4: non-128-multiple out_features exercises the lane-padding path.
    mod2 = LinearRecon(64, 200, n_tasks=2, key=k_p2)
    x2 = jax.random.normal(k_x, (4, 64), jnp.float32)
    outs4 = [jax.block_until_ready(o) for o in mod2(x2)]
    for t, o in enumerate(outs4):
        ref = x2 @ mod2.weights[t] + mod2.biases[t]
        ok = ok and (o.shape == (4, 200))
        ok = ok and bool(jnp.allclose(o, ref, atol=1e-4, rtol=1e-4))

    print("KERNEL_OK" if ok else "MISMATCH")
</pallas_src>

<mosaic_0001>
module attributes {stable_mosaic.version = 11 : i64} {
  func.func @_linear_block_kernel(%arg0: i32, %arg1: i32, %arg2: memref<8x128xf32, #tpu.memory_space<vmem>>, %arg3: memref<128x128xf32, #tpu.memory_space<vmem>>, %arg4: memref<1x128xf32, #tpu.memory_space<vmem>>, %arg5: memref<8x128xf32, #tpu.memory_space<vmem>>) attributes {dimension_semantics = [#tpu.dimension_semantics<parallel>, #tpu.dimension_semantics<parallel>], iteration_bounds = array<i64: 2, 1>, scalar_prefetch = 0 : i64, scratch_operands = 0 : i64, tpu.core_type = #tpu.core_type<tc>, window_params = [{transform_indices = @transform_0, window_bounds = array<i64: 8, 128>}, {transform_indices = @transform_1, window_bounds = array<i64: 128, 128>}, {transform_indices = @transform_2, window_bounds = array<i64: 1, 128>}, {transform_indices = @transform_3, window_bounds = array<i64: 8, 128>}]} {
    %c0 = arith.constant 0 : index
    %c0_0 = arith.constant 0 : index
    %0 = vector.load %arg2[%c0, %c0_0] : memref<8x128xf32, #tpu.memory_space<vmem>>, vector<8x128xf32>
    %c0_1 = arith.constant 0 : index
    %c0_2 = arith.constant 0 : index
    %1 = vector.load %arg3[%c0_1, %c0_2] : memref<128x128xf32, #tpu.memory_space<vmem>>, vector<128x128xf32>
    %cst = arith.constant dense<0.000000e+00> : vector<8x128xf32>
    %2 = tpu.matmul %0, %1, %cst {dimension_numbers = #tpu.dot_dimension_numbers<[1], [0], [0], [1], [0, 0, 1, 1], [], []>} : vector<8x128xf32>, vector<128x128xf32>, vector<8x128xf32> -> vector<8x128xf32>
    %c0_3 = arith.constant 0 : index
    %c0_4 = arith.constant 0 : index
    %3 = vector.load %arg4[%c0_3, %c0_4] : memref<1x128xf32, #tpu.memory_space<vmem>>, vector<1x128xf32>
    %4 = vector.broadcast %3 : vector<1x128xf32> to vector<8x128xf32>
    %5 = arith.addf %2, %4 : vector<8x128xf32>
    %c0_5 = arith.constant 0 : index
    %c0_6 = arith.constant 0 : index
    %6 = vector.load %arg5[%c0_5, %c0_6] : memref<8x128xf32, #tpu.memory_space<vmem>>, vector<8x128xf32>
    tpu.vector_store %arg5[%c0_5, %c0_6], %5 {strides = array<i32>} : memref<8x128xf32, #tpu.memory_space<vmem>>, vector<8x128xf32>,
    return
  }
  func.func @transform_0(%arg0: i32, %arg1: i32) -> (i32, i32) {
    %c0_i32 = arith.constant 0 : i32
    %c0_i32_0 = arith.constant 0 : i32
    return %arg1, %c0_i32 : i32, i32
  }
  func.func @transform_1(%arg0: i32, %arg1: i32) -> (i32, i32) {
    %c0_i32 = arith.constant 0 : i32
    %c0_i32_0 = arith.constant 0 : i32
    return %c0_i32, %arg0 : i32, i32
  }
  func.func @transform_2(%arg0: i32, %arg1: i32) -> (i32, i32) {
    %c0_i32 = arith.constant 0 : i32
    %c0_i32_0 = arith.constant 0 : i32
    return %c0_i32, %arg0 : i32, i32
  }
  func.func @transform_3(%arg0: i32, %arg1: i32) -> (i32, i32) {
    %c0_i32 = arith.constant 0 : i32
    return %arg1, %arg0 : i32, i32
  }
}

</mosaic_0001>

<bundles_post_ra>
// kernel: _linear_fused.1
= control target key start
LH: loop header
LB: loop body
LE: loop exit
PB: predicated region body
PF: predicated region fallthrough
CT: control target
= control target key end

     0   :  { %s957_s0 = inlined_call_operand.hbm [shape: f32[8,128], index: 0, kind: input, shape index: {}]   ;;  %s958_s1 = inlined_call_operand.hbm [shape: f32[128,256], index: 1, kind: input, shape index: {}]   ;;  %s959_s2 = inlined_call_operand.vmem [shape: f32[1,256], index: 2, kind: input, shape index: {}]   ;;  %s960_s3 = inlined_call_operand.hbm [shape: f32[8,256], index: 3, kind: output, shape index: {}]  }
   0x1   :  { %963 = sst [smem:[#allocation11_spill]] %s957_s0 }
   0x2   :  { %8 = vsyncpa [#allocation3], 0 }
   0x3   :  { %9 = vsyncpa [#allocation6], 0 }
   0x4   :  { %11 = vsyncpa [#allocation6 + $0x1], 0 }
   0x5   :  { %12 = vsyncpa [#allocation4], 0 }
   0x6   :  { %14 = vsyncpa [#allocation4 + $0x1], 0  ;;  %s764_s12 = smov 0   ;;  %s766_s13 = smov 0  }
   0x7   :  { %s768_s14 = smov 0   ;;  %s770_s15 = smov 0  }
   0x8   :  { %s772_s16 = smov 0   ;;  %s774_s17 = smov 0  }
   0x9 LB: > { %s450_s18 = sadd.s32 4294967295, %s734_s17   ;;  %s451_s19 = sadd.s32 4294967294, %s734_s17   ;;  %s734_s17 = sphi %s774_s17, %s20_s17   ;;  %s730_s16 = sphi %s772_s16, %s981_s16   ;;  %s726_s15 = sphi %s770_s15, %s980_s15   ;;  %s722_s14 = sphi %s768_s14, %s979_s14   ;;  %s718_s13 = sphi %s766_s13, %s978_s13   ;;  %s714_s12 = sphi %s764_s12, %s977_s12  }
   0xa   : > { %s65_s20 = sadd.s32 1, %s722_s14  ;;  %p72_p0 = scmp.ne.s32.totalorder %s722_s14, %s718_s13 }
   0xb   : > { %p73_p1 = scmp.eq.s32.totalorder %s734_s17, 0  ;;  %p78_p2 = scmp.ne.s32.totalorder %s718_s13, %s714_s12 }
   0xc   : > { %p802_p3 = scmp.eq.s32.totalorder %s450_s18, 0  ;;  %p130_p4 = scmp.eq.s32.totalorder %s450_s18, 1 }
   0xd   : > { %p806_p5 = por %p73_p1, %p72_p0  ;;  %p136_p6 = scmp.eq.s32.totalorder %s451_s19, 1 }
   0xe   : > { %p812_p7 = por %p802_p3, %p78_p2  ;;  %p816_p8 = por %p130_p4, %p72_p0 }
   0xf   : > { %p820_p9 = por %p136_p6, %p78_p2  ;;  %p452_p10 = scmp.ge.s32.totalorder %s734_s17, 1 }
  0x10   : > { %s966_s23 = scalar_select %p812_p7, 1, 0 }
  0x11   : > { %s967_s24 = scalar_select %p816_p8, 1, 0 }
  0x12   : > { %s968_s25 = scalar_select %p820_p9, 1, 0 }
  0x13   : > { %p143_p11 = scmp.lt.s32.totalorder %s734_s17, 3  ;;  %s736_s27 = smov [#allocation2]  }
  0x14   : > { %s158_s28 = sshll.u32 %s736_s27, 4  ;;  %p539_p1 = scmp.lt.s32.totalorder %s734_s17, 2  ;;  %s159_s28 = int_to_ptr.vmem [resolvable:$true] %s158_s28 }
  0x15   : > { %p827_p13 = pnand %p452_p10, %p143_p11  ;;  %s32_s4 = sadd.s32 1, %s730_s16 }
  0x16   : > { %p836_p4 = pnand %p539_p1, %p806_p5  ;;  %p34_p6 = scmp.ge.s32.totalorder %s32_s4, 2 }
  0x17   : > { %p526_p0 = pneg %p827_p13  ;;  %s169_s5 = sand.u32 1, %s722_s14  }
  0x18   : > { %s607_s6 = scalar_lea.vmem %s159_s28, 128  ;;  %p615_p8 = scmp.lt.s32.totalorder %s159_s28, %s159_s28 }
  0x19   : > { %p842_p2 = pnand %p526_p0, %p802_p3  ;;  %p608_p11 = scmp.ne.s32.totalorder %s159_s28, %s607_s6 }
  0x1a   : > { %p616_p5 = scmp.lt.s32.totalorder %s607_s6, %s607_s6 }
  0x1b   : > { %p598_p10 = pneg %p842_p2 }
  0x1c   : > { %p617_p1 = por %p616_p5, %p615_p8 }
  0x1d   : > { %p610_p12 = pnand %p608_p11, %p598_p10 }
  0x1f   : > { %p611_p9 = pneg %p610_p12 }
  0x21   : > { %p618_p7 = pnand %p617_p1, %p611_p9 }
  0x23   : > { %621 = shalt.err (!%p618_p7)
}
  0x24   : > { %s972_s0 = sld [smem:[#allocation11_spill]]  ;;  %s983_s4 = smov (%p34_p6, %s32_s4), 0 }
  0x25   : > { %s455_s9 = sshll.u32 %s169_s5, 7  ;;  %s62_s10 = ssub.s32 %s730_s16, %s983_s4 }
  0x26   : > { %p63_p12 = scmp.eq.s32.totalorder %s62_s10, 0  ;;  %s456_s11 = sshll.u32 %s730_s16, 7 }
  0x27   : > { %s178_s22 = scalar_lea.hbm %s958_s1, %s456_s11  ;;  %s173_s27 = scalar_lea.vmem [#allocation5], %s455_s9 }
  0x28   : > { %s179_s30 = sshll.u32 %s173_s27, 4  ;;  %s170_s7 = scalar_lea.sflag [#allocation6], %s169_s5  ;;  %s180_s30 = int_to_ptr.vmem [resolvable:$true] %s179_s30 }
  0x29   : > { %s866_s6 = scalar_select %p63_p12, %s722_s14, %s65_s20  }
  0x2a   : > { %529 = dma.hbm_to_vmem [thread:$0]  (!%p842_p2), %s972_s0, 128, %s159_s28, [#allocation3]  }
  0x2b   : > { %p624_p7 = pneg %p836_p4  ;;  %s635_s28 = scalar_lea.vmem %s180_s30, 2048 }
  0x2c   : > { %p636_p8 = scmp.ne.s32.totalorder %s180_s30, %s635_s28  ;;  %s737_s8 = smov [#allocation5]  }
  0x2d   : > { %s640_s10 = sshll.u32 %s737_s8, 4  ;;  %s641_s10 = int_to_ptr.vmem [resolvable:$false] %s640_s10 }
  0x2e   : > { %p638_p9 = pnand %p636_p8, %p624_p7  ;;  %s642_s0 = scalar_lea.vmem %s641_s10, 4096 }
  0x2f   : > { %p643_p2 = scmp.lt.s32.totalorder %s180_s30, %s641_s10  ;;  %p644_p6 = scmp.lt.s32.totalorder %s642_s0, %s635_s28 }
  0x30   : > { %p639_p0 = pneg %p638_p9 }
  0x31   : > { %p645_p10 = por %p644_p6, %p643_p2 }
  0x33   : > { %p646_p11 = pnand %p645_p10, %p639_p0 }
  0x35   : > { %649 = shalt.err (!%p646_p11)
}
  0x36   : > { %s738_s9 = smov 256   ;;  %s739_s20 = smov 128  }
  0x37   : > { %s740_s11 = smov 8   ;;  %197 = sbr.rel (%p827_p13) target bundleno = 306 (0x132), region = 32 }
  0x38   : > { %533 = dma.hbm_to_vmem [thread:$0]  (!%p836_p4), %s178_s22, 2048, %s180_s30, %s170_s7, %s738_s9, %s739_s20, %s740_s11  }
  0x3c   : > { %701 = dma.done.wait (%p802_p3), [#allocation3], 128  }
  0x3d   : > { %703 = vsyncadd (%p802_p3), [#allocation3], 4294967168  ;;  %s879_s0 = sand.u32 1, %s718_s13   ;;  %p973_p4 = scmp.ne.s32.totalorder %s966_s23, 0 }
  0x3e   : > { %s459_s5 = sshll.u32 %s879_s0, 7  ;;  %s204_s18 = scalar_lea.sflag [#allocation6], %s879_s0 }
  0x3f   : > { %s883_s19 = scalar_lea.vmem [#allocation5], %s459_s5 }
  0x40   : > { %705 = dma.done.wait (%p973_p4), %s204_s18, 2048  }
  0x41   : > { %707 = vsyncadd (%p973_p4), %s204_s18, 4294965248  ;;  %v741_v0 = vmov 0.0   ;;  %vm742_vm0 = vmmov 0   ;;  %v252_v1 = vld [vmem:[%s883_s19 + $0x78] sm:$0xff]  ;;  %v251_v2 = vld [vmem:[%s883_s19 + $0x70] sm:$0xff]  ;;  %p233_p3 = scmp.lt.s32.totalorder %s726_s15, 1 }
  0x42   : > { %483 = vmatprep.subr.mxu0 %v741_v0  ;;  %515 = vmatprep.mubr.msk.f32.mxu0 %vm742_vm0, %v741_v0  ;;  %v250_v3 = vld [vmem:[%s883_s19 + $0x68] sm:$0xff]  ;;  %v249_v4 = vld [vmem:[%s883_s19 + $0x60] sm:$0xff]  ;;  %v248_v5 = vld [vmem:[%s883_s19 + $0x58] sm:$0xff]  ;;  %s460_s23 = sshll.u32 %s879_s0, 3  ;;  %s463_s27 = sshll.u32 %s726_s15, 7 }
  0x43   : > { %484 = vmatpush3.msra.mxu0 %v252_v1  ;;  %v247_v6 = vld [vmem:[%s883_s19 + $0x50] sm:$0xff]  ;;  %v246_v7 = vld [vmem:[%s883_s19 + $0x48] sm:$0xff]  ;;  %v245_v8 = vld [vmem:[%s883_s19 + $0x40] sm:$0xff]  ;;  %s234_s21 = scalar_select %p233_p3, %s726_s15, 1 }
  0x44   : > { %485 = vmatprep.subr.mxu0 %v741_v0  ;;  %v244_v9 = vld [vmem:[%s883_s19 + $0x38] sm:$0xff]  ;;  %v243_v10 = vld [vmem:[%s883_s19 + $0x30] sm:$0xff]  ;;  %v242_v11 = vld [vmem:[%s883_s19 + $0x28] sm:$0xff]  ;;  %s232_s30 = scalar_lea.vmem [#allocation7], %s460_s23  ;;  %s915_s10 = scalar_lea.hbm %s960_s3, %s463_s27 }
  0x45   : > { %486 = vmatpush3.msra.mxu0 %v251_v2  ;;  %v241_v12 = vld [vmem:[%s883_s19 + $0x20] sm:$0xff]  ;;  %v240_v13 = vld [vmem:[%s883_s19 + $0x18] sm:$0xff]  ;;  %v239_v14 = vld [vmem:[%s883_s19 + $0x10] sm:$0xff]  ;;  %s235_s22 = scalar_lea.vmem %s959_s2, %s234_s21  ;;  %s347_s7 = sshll.u32 %s232_s30, 4  ;;  %s348_s7 = int_to_ptr.vmem [resolvable:$true] %s347_s7 }
  0x46   : > { %487 = vmatprep.subr.mxu0 %v741_v0  ;;  %v238_v15 = vld [vmem:[%s883_s19 + $0x8] sm:$0xff]  ;;  %v237_v16 = vld [vmem:[%s883_s19] sm:$0xff]  ;;  %v236_v17 = vld [vmem:[#allocation2] sm:$0xff]  ;;  %s332_s9 = scalar_lea.sflag [#allocation4], %s879_s0  ;;  %s650_s20 = scalar_lea.vmem %s348_s7, 128 }
  0x47   : > { %488 = vmatpush3.msra.mxu0 %v250_v3  ;;  %v461_v18 = vld [vmem:[%s235_s22] ss:$0 sm:$0xff]  ;;  %p651_p13 = scmp.ne.s32.totalorder %s348_s7, %s650_s20  ;;  %p974_p5 = scmp.ne.s32.totalorder %s967_s24, 0 }
  0x48   : > { %489 = vmatprep.subr.mxu0 %v741_v0  ;;  %s743_s11 = smov [#allocation7]  }
  0x49   : > { %490 = vmatpush3.msra.mxu0 %v249_v4  ;;  %p652_p1 = pnand %p651_p13, %p974_p5  ;;  %s654_s15 = sshll.u32 %s743_s11, 4  ;;  %s655_s15 = int_to_ptr.vmem [resolvable:$false] %s654_s15 }
  0x4a   : > { %491 = vmatprep.subr.mxu0 %v741_v0  ;;  %s656_s5 = scalar_lea.vmem %s655_s15, 256  ;;  %p657_p7 = scmp.lt.s32.totalorder %s348_s7, %s655_s15 }
  0x4b   : > { %492 = vmatpush3.msra.mxu0 %v248_v5  ;;  %p653_p12 = pneg %p652_p1  ;;  %p658_p8 = scmp.lt.s32.totalorder %s656_s5, %s650_s20 }
  0x4c   : > { %493 = vmatprep.subr.mxu0 %v741_v0 }
  0x4d   : > { %494 = vmatpush3.msra.mxu0 %v247_v6  ;;  %p659_p9 = por %p658_p8, %p657_p7 }
  0x4e   : > { %495 = vmatprep.subr.mxu0 %v741_v0 }
  0x4f   : > { %496 = vmatpush3.msra.mxu0 %v246_v7  ;;  %p660_p0 = pnand %p659_p9, %p653_p12 }
  0x50   : > { %497 = vmatprep.subr.mxu0 %v741_v0 }
  0x51   : > { %498 = vmatpush3.msra.mxu0 %v245_v8 }
  0x52   : > { %499 = vmatprep.subr.mxu0 %v741_v0 }
  0x53   : > { %500 = vmatpush3.msra.mxu0 %v244_v9 }
  0x54   : > { %501 = vmatprep.subr.mxu0 %v741_v0 }
  0x55   : > { %502 = vmatpush3.msra.mxu0 %v243_v10 }
  0x56   : > { %503 = vmatprep.subr.mxu0 %v741_v0 }
  0x57   : > { %504 = vmatpush3.msra.mxu0 %v242_v11 }
  0x58   : > { %505 = vmatprep.subr.mxu0 %v741_v0 }
  0x59   : > { %506 = vmatpush3.msra.mxu0 %v241_v12 }
  0x5a   : > { %507 = vmatprep.subr.mxu0 %v741_v0 }
  0x5b   : > { %508 = vmatpush3.msra.mxu0 %v240_v13 }
  0x5c   : > { %509 = vmatprep.subr.mxu0 %v741_v0 }
  0x5d   : > { %510 = vmatpush3.msra.mxu0 %v239_v14 }
  0x5e   : > { %511 = vmatprep.subr.mxu0 %v741_v0 }
  0x5f   : > { %512 = vmatpush3.msra.mxu0 %v238_v15 }
  0x60   : > { %513 = vmatprep.subr.mxu0 %v741_v0 }
  0x61   : > { %514 = vmatpush3.msra.mxu0 %v237_v16 }
  0x62   : > { %516 = vmatmul.mubr.f32.vlgmr.msra.gmra.mxu0 %v236_v17 }
 0x122   : > { %v326_v19 = vpop.f32.mrf.mxu0 }
 0x123   : > { %v327_v20 = vadd.f32 %v461_v18, %v326_v19 }
 0x124   : > { %v517_v21 = vpop.f32.mrf.mxu0 }
 0x125   : > { %330 = vst [vmem:[%s232_s30] sm:$0xff] %v327_v20 }
 0x126   : > { %663 = shalt.err (!%p660_p0)
}
 0x127   : > { %s664_s18 = scalar_lea.hbm %s915_s10, 128  ;;  %s668_s21 = scalar_lea.hbm %s960_s3, 256 }
 0x128   : > { %p665_p2 = scmp.ne.s32.totalorder %s915_s10, %s664_s18  ;;  %p669_p11 = scmp.lt.s32.totalorder %s915_s10, %s960_s3 }
 0x129   : > { %p670_p4 = scmp.lt.s32.totalorder %s668_s21, %s664_s18 }
 0x12a   : > { %p666_p6 = pnand %p665_p2, %p974_p5 }
 0x12b   : > { %p671_p3 = por %p670_p4, %p669_p11 }
 0x12c   : > { %p667_p10 = pneg %p666_p6 }
 0x12e   : > { %p672_p13 = pnand %p671_p3, %p667_p10 }
 0x130   : > { %675 = shalt.err (!%p672_p13)
}
 0x131   : > { %524 = dma.vmem_to_hbm [thread:$0]  (%p974_p5), %s348_s7, 128, %s915_s10, %s332_s9  }
 0x132 PF: > { %s359_s29 = sand.u32 1, %s714_s12   ;;  %p975_p1 = scmp.ne.s32.totalorder %s968_s25, 0 }
 0x133   : > { %p976_p12 = scmp.ge.s32.totalorder %s734_s17, 2  ;;  %s360_s22 = scalar_lea.sflag [#allocation4], %s359_s29 }
 0x135   : > { %p535_p7 = pnand %p976_p12, %p975_p1 }
 0x137   : > { %p536_p8 = pneg %p535_p7 }
 0x139   : > { %709 = dma.done.wait (%p536_p8), %s360_s22, 128  }
 0x13a   : > { %711 = vsyncadd (%p536_p8), %s360_s22, 4294967168  ;;  %s20_s17 = sadd.s32 1, %s734_s17   ;;  %s977_s12 = smov %s718_s13 }
 0x13b   : > { %p17_p9 = scmp.ge.s32.totalorder %s20_s17, 4   ;;  %s978_s13 = smov %s722_s14 }
 0x13c   : > { %s979_s14 = smov %s866_s6  ;;  %s980_s15 = smov %s730_s16 }
 0x13d   : > { %s981_s16 = smov %s983_s4  ;;  %19 = sbr.rel (!%p17_p9) target bundleno = 9 (0x9), region = 86 }
 0x142   :  { %365 = vsyncpa [#allocation3], 1 }
 0x143   :  { %367 = vsyncpa [#allocation3 + $0x1], 1 }
 0x144   :  { %368 = vsyncpa [#allocation6], 1 }
 0x145   :  { %370 = vsyncpa [#allocation6 + $0x1], 1 }
 0x146   :  { %371 = vsyncpa [#allocation4], 1 }
 0x147   :  { %373 = vsyncpa [#allocation4 + $0x1], 1 }

</bundles_post_ra>
